<compile_context>
chip_gen: v5e
topology: v5e:2x2
jax: 0.10.0
libtpu: 0.0.40
codegen_flags: <defaults>
</compile_context>

<pallas_src>
import functools

import jax
import jax.numpy as jnp
from jax.experimental import pallas as pl
from jax.experimental.pallas import tpu as pltpu

HIDDEN = 64
SLAB_COLS = 4 * HIDDEN   # 256 lanes; each packed block uses the leftmost columns
LANE = 128


def _round_up(n, m):
    return ((n + m - 1) // m) * m


def _slab_layout(d_in):
    """Row offsets of each parameter block inside the packed (rows, 256) slab."""
    off = {}
    r = 0
    off["w1"] = r; r += _round_up(d_in, 8)   # (d_in, 64)
    off["b1"] = r; r += 8                    # (1, 64)
    off["w2"] = r; r += HIDDEN               # (64, 64)
    off["b2"] = r; r += 8                    # (1, 64)
    off["wg"] = r; r += 2 * HIDDEN           # (128, 256) fused [W_ih; W_hh]
    off["bg"] = r; r += 8                    # (1, 256)   fused b_ih + b_hh
    off["wo"] = r; r += HIDDEN               # (64, <=256) zero-padded along lanes
    off["bo"] = r; r += 8                    # (1, <=256)
    off["rows"] = r
    return off


def pack_params(params):
    """Fuse gate weights and pack all parameters into one f32 slab (done once)."""
    d_in = params["w1"].shape[0]
    num_out = params["w_out"].shape[1]
    assert num_out <= SLAB_COLS, "num_outputs > 256 not supported by this packing"
    lay = _slab_layout(d_in)
    slab = jnp.zeros((lay["rows"], SLAB_COLS), jnp.float32)

    def put(s, row, a):
        a = jnp.asarray(a, jnp.float32)
        return s.at[row:row + a.shape[0], :a.shape[1]].set(a)

    slab = put(slab, lay["w1"], params["w1"])
    slab = put(slab, lay["b1"], params["b1"])
    slab = put(slab, lay["w2"], params["w2"])
    slab = put(slab, lay["b2"], params["b2"])
    # Fused gate parameters: gates = [a2, h] @ [W_ih; W_hh] + (b_ih + b_hh)
    slab = put(slab, lay["wg"],
               jnp.concatenate([params["w_ih"], params["w_hh"]], axis=0))
    slab = put(slab, lay["bg"], params["b_ih"] + params["b_hh"])
    # Output projection, zero-padded along lanes -> lane-dense logits store.
    slab = put(slab, lay["wo"], params["w_out"])
    slab = put(slab, lay["bo"], params["b_out"])
    return slab


def _make_kernel(d_in, n_out_pad, lay):
    H = HIDDEN

    def kernel(x_ref, hc_ref, slab_ref, logits_ref, hcnew_ref):
        x = x_ref[...]
        hc = hc_ref[...]
        h = hc[:, :H]
        c = hc[:, H:]

        # fc1 + tanh
        w1 = slab_ref[lay["w1"]:lay["w1"] + d_in, :H]
        b1 = slab_ref[lay["b1"]:lay["b1"] + 1, :H]
        a1 = jnp.tanh(jnp.dot(x, w1, preferred_element_type=jnp.float32) + b1)

        # fc2 + tanh
        w2 = slab_ref[lay["w2"]:lay["w2"] + H, :H]
        b2 = slab_ref[lay["b2"]:lay["b2"] + 1, :H]
        a2 = jnp.tanh(jnp.dot(a1, w2, preferred_element_type=jnp.float32) + b2)

        # Single fused gate matmul: (B, 128) @ (128, 256) + fused bias.
        wg = slab_ref[lay["wg"]:lay["wg"] + 2 * H, :4 * H]
        bg = slab_ref[lay["bg"]:lay["bg"] + 1, :4 * H]
        a2h = jnp.concatenate([a2, h], axis=-1)
        gates = jnp.dot(a2h, wg, preferred_element_type=jnp.float32) + bg

        # PyTorch gate order i, f, g, o.
        # sigmoid over the aligned first 128 lanes (i and f) in one shot.
        if_sig = jax.nn.sigmoid(gates[:, :2 * H])
        i_g = if_sig[:, :H]
        f_g = if_sig[:, H:]
        g_g = jnp.tanh(gates[:, 2 * H:3 * H])
        o_g = jax.nn.sigmoid(gates[:, 3 * H:])

        c_new = f_g * c + i_g * g_g
        h_new = o_g * jnp.tanh(c_new)

        # Output projection, lane-padded to a multiple of 128 -> unmasked store.
        wo = slab_ref[lay["wo"]:lay["wo"] + H, :n_out_pad]
        bo = slab_ref[lay["bo"]:lay["bo"] + 1, :n_out_pad]
        logits_ref[...] = jnp.dot(h_new, wo, preferred_element_type=jnp.float32) + bo

        # Single lane-dense (B, 128) state store, aliased onto the hc input.
        hcnew_ref[...] = jnp.concatenate([h_new, c_new], axis=-1)

    return kernel


@functools.partial(jax.jit, static_argnames=("num_outputs",))
def custom_lstm_wrapper_forward(x, h, c, slab, *, num_outputs):
    """Whole forward pass in one un-gridded Pallas call.

    x: (B, D_in); h, c: (B, 64); slab: packed params from pack_params.
    Returns (logits (B, num_outputs), h_new (B, 64), c_new (B, 64)).
    """
    B, d_in = x.shape
    lay = _slab_layout(d_in)
    assert slab.shape == (lay["rows"], SLAB_COLS)
    n_out_pad = _round_up(max(num_outputs, 1), LANE)

    hc = jnp.concatenate([h, c], axis=-1)  # (B, 128) lane-dense recurrent state

    vmem = pl.BlockSpec(memory_space=pltpu.MemorySpace.VMEM)
    logits_pad, hc_new = pl.pallas_call(
        _make_kernel(d_in, n_out_pad, lay),
        out_shape=(
            jax.ShapeDtypeStruct((B, n_out_pad), jnp.float32),
            jax.ShapeDtypeStruct((B, 2 * HIDDEN), jnp.float32),
        ),
        in_specs=[vmem, vmem, vmem],
        out_specs=(vmem, vmem),
        # Recurrent state written in place over the hc input buffer.
        input_output_aliases={1: 1},
    )(x, hc, slab)

    logits = logits_pad[:, :num_outputs]
    h_new = hc_new[:, :HIDDEN]
    c_new = hc_new[:, HIDDEN:]
    return logits, h_new, c_new


def init_params(key, input_size, num_outputs):
    """Deterministic synthetic parameters (shapes match nn.Linear / nn.LSTM),
    stored transposed as (in, out)."""
    ks = jax.random.split(key, 10)

    def uniform(k, shape, fan_in):
        bound = 1.0 / jnp.sqrt(jnp.float32(fan_in))
        return jax.random.uniform(k, shape, jnp.float32, -bound, bound)

    return {
        "w1": uniform(ks[0], (input_size, HIDDEN), input_size),
        "b1": uniform(ks[1], (1, HIDDEN), input_size),
        "w2": uniform(ks[2], (HIDDEN, HIDDEN), HIDDEN),
        "b2": uniform(ks[3], (1, HIDDEN), HIDDEN),
        "w_ih": uniform(ks[4], (HIDDEN, 4 * HIDDEN), HIDDEN),
        "b_ih": uniform(ks[5], (1, 4 * HIDDEN), HIDDEN),
        "w_hh": uniform(ks[6], (HIDDEN, 4 * HIDDEN), HIDDEN),
        "b_hh": uniform(ks[7], (1, 4 * HIDDEN), HIDDEN),
        "w_out": uniform(ks[8], (HIDDEN, num_outputs), HIDDEN),
        "b_out": uniform(ks[9], (1, num_outputs), HIDDEN),
    }


def reference_forward(x, h, c, p):
    """Pure-JAX reference mirroring the PyTorch module (unfused params)."""
    a1 = jnp.tanh(x @ p["w1"] + p["b1"])
    a2 = jnp.tanh(a1 @ p["w2"] + p["b2"])
    gates = a2 @ p["w_ih"] + p["b_ih"] + h @ p["w_hh"] + p["b_hh"]
    i_g = jax.nn.sigmoid(gates[:, 0 * HIDDEN:1 * HIDDEN])
    f_g = jax.nn.sigmoid(gates[:, 1 * HIDDEN:2 * HIDDEN])
    g_g = jnp.tanh(gates[:, 2 * HIDDEN:3 * HIDDEN])
    o_g = jax.nn.sigmoid(gates[:, 3 * HIDDEN:4 * HIDDEN])
    c_new = f_g * c + i_g * g_g
    h_new = o_g * jnp.tanh(c_new)
    logits = h_new @ p["w_out"] + p["b_out"]
    return logits, h_new, c_new


if __name__ == "__main__":
    B = 2            # batch
    INPUT_SIZE = 16  # obs_space.shape[0]
    NUM_OUTPUTS = 8  # num_outputs

    key = jax.random.PRNGKey(0)
    k_x, k_h, k_c, k_p = jax.random.split(key, 4)

    x = jax.random.normal(k_x, (B, INPUT_SIZE), jnp.float32)
    h = jax.random.normal(k_h, (B, HIDDEN), jnp.float32) * 0.1
    c = jax.random.normal(k_c, (B, HIDDEN), jnp.float32) * 0.1
    params = init_params(k_p, INPUT_SIZE, NUM_OUTPUTS)
    slab = pack_params(params)  # packed + fused once, reused every step

    logits, h_new, c_new = custom_lstm_wrapper_forward(
        x, h, c, slab, num_outputs=NUM_OUTPUTS)
    jax.block_until_ready((logits, h_new, c_new))

    ref_logits, ref_h, ref_c = reference_forward(x, h, c, params)
    assert jnp.allclose(logits, ref_logits, atol=1e-5), "logits mismatch"
    assert jnp.allclose(h_new, ref_h, atol=1e-5), "h mismatch"
    assert jnp.allclose(c_new, ref_c, atol=1e-5), "c mismatch"

    print("KERNEL_OK")
</pallas_src>

<mosaic_0001>
module attributes {stable_mosaic.version = 11 : i64} {
  func.func @kernel(%arg0: memref<2x16xf32, #tpu.memory_space<vmem>>, %arg1: memref<2x128xf32, #tpu.memory_space<vmem>>, %arg2: memref<304x256xf32, #tpu.memory_space<vmem>>, %arg3: memref<2x128xf32, #tpu.memory_space<vmem>>, %arg4: memref<2x128xf32, #tpu.memory_space<vmem>>) attributes {dimension_semantics = [], scalar_prefetch = 0 : i64, scratch_operands = 0 : i64, tpu.core_type = #tpu.core_type<tc>} {
    %c0 = arith.constant 0 : index
    %c0_0 = arith.constant 0 : index
    %0 = vector.load %arg0[%c0, %c0_0] : memref<2x16xf32, #tpu.memory_space<vmem>>, vector<2x16xf32>
    %c0_1 = arith.constant 0 : index
    %c0_2 = arith.constant 0 : index
    %1 = vector.load %arg1[%c0_1, %c0_2] : memref<2x128xf32, #tpu.memory_space<vmem>>, vector<2x128xf32>
    %2 = vector.extract_strided_slice %1 {offsets = [0, 0], sizes = [2, 64], strides = [1, 1]} : vector<2x128xf32> to vector<2x64xf32>
    %3 = vector.extract_strided_slice %1 {offsets = [0, 64], sizes = [2, 64], strides = [1, 1]} : vector<2x128xf32> to vector<2x64xf32>
    %c0_3 = arith.constant 0 : index
    %c0_4 = arith.constant 0 : index
    %4 = vector.load %arg2[%c0_3, %c0_4] : memref<304x256xf32, #tpu.memory_space<vmem>>, vector<16x64xf32>
    %c16 = arith.constant 16 : index
    %c0_5 = arith.constant 0 : index
    %5 = vector.load %arg2[%c16, %c0_5] : memref<304x256xf32, #tpu.memory_space<vmem>>, vector<1x64xf32>
    %cst = arith.constant dense<0.000000e+00> : vector<2x64xf32>
    %6 = tpu.matmul %0, %4, %cst {dimension_numbers = #tpu.dot_dimension_numbers<[1], [0], [0], [1], [0, 0, 1, 1], [], []>} : vector<2x16xf32>, vector<16x64xf32>, vector<2x64xf32> -> vector<2x64xf32>
    %7 = vector.broadcast %5 : vector<1x64xf32> to vector<2x64xf32>
    %8 = arith.addf %6, %7 : vector<2x64xf32>
    %9 = math.tanh %8 : vector<2x64xf32>
    %c24 = arith.constant 24 : index
    %c0_6 = arith.constant 0 : index
    %10 = vector.load %arg2[%c24, %c0_6] : memref<304x256xf32, #tpu.memory_space<vmem>>, vector<64x64xf32>
    %c88 = arith.constant 88 : index
    %c0_7 = arith.constant 0 : index
    %11 = vector.load %arg2[%c88, %c0_7] : memref<304x256xf32, #tpu.memory_space<vmem>>, vector<1x64xf32>
    %cst_8 = arith.constant dense<0.000000e+00> : vector<2x64xf32>
    %12 = tpu.matmul %9, %10, %cst_8 {dimension_numbers = #tpu.dot_dimension_numbers<[1], [0], [0], [1], [0, 0, 1, 1], [], []>} : vector<2x64xf32>, vector<64x64xf32>, vector<2x64xf32> -> vector<2x64xf32>
    %13 = vector.broadcast %11 : vector<1x64xf32> to vector<2x64xf32>
    %14 = arith.addf %12, %13 : vector<2x64xf32>
    %15 = math.tanh %14 : vector<2x64xf32>
    %c96 = arith.constant 96 : index
    %c0_9 = arith.constant 0 : index
    %16 = vector.load %arg2[%c96, %c0_9] : memref<304x256xf32, #tpu.memory_space<vmem>>, vector<128x256xf32>
    %c224 = arith.constant 224 : index
    %c0_10 = arith.constant 0 : index
    %17 = vector.load %arg2[%c224, %c0_10] : memref<304x256xf32, #tpu.memory_space<vmem>>, vector<1x256xf32>
    %18 = tpu.concatenate %15, %2 in 1 : vector<2x64xf32>, vector<2x64xf32> -> vector<2x128xf32>
    %cst_11 = arith.constant dense<0.000000e+00> : vector<2x256xf32>
    %19 = tpu.matmul %18, %16, %cst_11 {dimension_numbers = #tpu.dot_dimension_numbers<[1], [0], [0], [1], [0, 0, 1, 1], [], []>} : vector<2x128xf32>, vector<128x256xf32>, vector<2x256xf32> -> vector<2x256xf32>
    %20 = vector.broadcast %17 : vector<1x256xf32> to vector<2x256xf32>
    %21 = arith.addf %19, %20 : vector<2x256xf32>
    %22 = vector.extract_strided_slice %21 {offsets = [0, 0], sizes = [2, 128], strides = [1, 1]} : vector<2x256xf32> to vector<2x128xf32>
    %23 = arith.negf %22 : vector<2x128xf32>
    %24 = math.exp %23 : vector<2x128xf32>
    %cst_12 = arith.constant 1.000000e+00 : f32
    %25 = vector.broadcast %cst_12 : f32 to vector<2x128xf32>
    %26 = arith.addf %25, %24 : vector<2x128xf32>
    %27 = arith.divf %25, %26 : vector<2x128xf32>
    %28 = vector.extract_strided_slice %27 {offsets = [0, 0], sizes = [2, 64], strides = [1, 1]} : vector<2x128xf32> to vector<2x64xf32>
    %29 = vector.extract_strided_slice %27 {offsets = [0, 64], sizes = [2, 64], strides = [1, 1]} : vector<2x128xf32> to vector<2x64xf32>
    %30 = vector.extract_strided_slice %21 {offsets = [0, 128], sizes = [2, 64], strides = [1, 1]} : vector<2x256xf32> to vector<2x64xf32>
    %31 = math.tanh %30 : vector<2x64xf32>
    %32 = vector.extract_strided_slice %21 {offsets = [0, 192], sizes = [2, 64], strides = [1, 1]} : vector<2x256xf32> to vector<2x64xf32>
    %33 = arith.negf %32 : vector<2x64xf32>
    %34 = math.exp %33 : vector<2x64xf32>
    %cst_13 = arith.constant 1.000000e+00 : f32
    %35 = vector.broadcast %cst_13 : f32 to vector<2x64xf32>
    %36 = arith.addf %35, %34 : vector<2x64xf32>
    %37 = arith.divf %35, %36 : vector<2x64xf32>
    %38 = arith.mulf %29, %3 : vector<2x64xf32>
    %39 = arith.mulf %28, %31 : vector<2x64xf32>
    %40 = arith.addf %38, %39 : vector<2x64xf32>
    %41 = math.tanh %40 : vector<2x64xf32>
    %42 = arith.mulf %37, %41 : vector<2x64xf32>
    %c232 = arith.constant 232 : index
    %c0_14 = arith.constant 0 : index
    %43 = vector.load %arg2[%c232, %c0_14] : memref<304x256xf32, #tpu.memory_space<vmem>>, vector<64x128xf32>
    %c296 = arith.constant 296 : index
    %c0_15 = arith.constant 0 : index
    %44 = vector.load %arg2[%c296, %c0_15] : memref<304x256xf32, #tpu.memory_space<vmem>>, vector<1x128xf32>
    %cst_16 = arith.constant dense<0.000000e+00> : vector<2x128xf32>
    %45 = tpu.matmul %42, %43, %cst_16 {dimension_numbers = #tpu.dot_dimension_numbers<[1], [0], [0], [1], [0, 0, 1, 1], [], []>} : vector<2x64xf32>, vector<64x128xf32>, vector<2x128xf32> -> vector<2x128xf32>
    %46 = vector.broadcast %44 : vector<1x128xf32> to vector<2x128xf32>
    %47 = arith.addf %45, %46 : vector<2x128xf32>
    %c0_17 = arith.constant 0 : index
    %c0_18 = arith.constant 0 : index
    %48 = vector.load %arg3[%c0_17, %c0_18] : memref<2x128xf32, #tpu.memory_space<vmem>>, vector<2x128xf32>
    tpu.vector_store %arg3[%c0_17, %c0_18], %47 {strides = array<i32>} : memref<2x128xf32, #tpu.memory_space<vmem>>, vector<2x128xf32>,
    %49 = tpu.concatenate %42, %40 in 1 : vector<2x64xf32>, vector<2x64xf32> -> vector<2x128xf32>
    %c0_19 = arith.constant 0 : index
    %c0_20 = arith.constant 0 : index
    %50 = vector.load %arg4[%c0_19, %c0_20] : memref<2x128xf32, #tpu.memory_space<vmem>>, vector<2x128xf32>
    tpu.vector_store %arg4[%c0_19, %c0_20], %49 {strides = array<i32>} : memref<2x128xf32, #tpu.memory_space<vmem>>, vector<2x128xf32>,
    return
  }
}

</mosaic_0001>

<bundles_post_ra>
// kernel: custom_lstm_wrapper_forward.1
= control target key start
LH: loop header
LB: loop body
LE: loop exit
PB: predicated region body
PF: predicated region fallthrough
CT: control target
= control target key end

     0   :  { %10 = vsyncpa [#allocation3], 0  ;;  %s422_s0 = inlined_call_operand.vmem [shape: f32[2,16], index: 0, kind: input, shape index: {}]   ;;  %s423_s1 = inlined_call_operand.vmem [shape: f32[2,128], index: 1, kind: input, shape index: {}, may-alias: {1,4}]   ;;  %s424_s2 = inlined_call_operand.hbm [shape: f32[304,256], index: 2, kind: input, shape index: {}]   ;;  %s425_s3 = inlined_call_operand.hbm [shape: f32[2,128], index: 3, kind: output, shape index: {0}]   ;;  %s426_s4 = inlined_call_operand.vmem [shape: f32[2,128], index: 4, kind: output, shape index: {1}, may-alias: {1,4}]  }
   0x1   :  { %11 = vsyncpa [#allocation4], 0  ;;  %s20_s17 = sshll.u32 %s424_s2, 4  ;;  %s366_s18 = smov [#allocation2]   ;;  %s21_s17 = int_to_ptr.hbm [resolvable:$true] %s20_s17 }
   0x2   :  { %s22_s19 = sshll.u32 %s366_s18, 4  ;;  %s367_s20 = smov 256   ;;  %s23_s19 = int_to_ptr.vmem [resolvable:$true] %s22_s19 }
   0x3   :  { %s368_s21 = smov 16  }
   0x4   :  { %28 = dma.hbm_to_vmem [thread:$0]  %s21_s17, 9728, %s23_s19, [#allocation3], %s367_s20, %s367_s20, %s368_s21  }
   0x5   :  { %362 = dma.done.wait [#allocation3], 9728  }
   0x6   :  { %363 = vsyncadd [#allocation3], 4294957568  ;;  %v36_v0 = vld [vmem:[#allocation2 + $0x10] sm:$0xff]  ;;  %v35_v1 = vld [vmem:[#allocation2] sm:$0xff]  ;;  %vm38_vm0 = vcmask 130048   ;;  %s369_s24 = smov 64  }
   0x7   :  { %56 = vmatpush.msra.mxu0 %v36_v0  ;;  %v33_v2 = vld [vmem:[%s422_s0] sm:$0x3]  ;;  %v69_v4 = vld [vmem:[#allocation2 + $0x90] sm:$0xff]  ;;  %v128_v13 = vld [vmem:[#allocation2 + $0x1b8] sm:$0xff]  ;;  %vm72_vm1 = vcmask 523264   ;;  %s370_s26 = smov [#allocation5]  }
   0x8   :  { %v70_v3 = vld [vmem:[#allocation2 + $0xa0] sm:$0xff]  ;;  %v67_v6 = vld [vmem:[#allocation2 + $0x70] sm:$0xff]  ;;  %v126_v15 = vld [vmem:[#allocation2 + $0x1a8] sm:$0xff]  ;;  %161 = vmatpush.msra.mxu3 %v128_v13  ;;  %s272_s27 = sshll.u32 %s370_s26, 4  ;;  %s274_s30 = sshll.u32 %s425_s3, 4  ;;  %s273_s27 = int_to_ptr.vmem [resolvable:$true] %s272_s27  ;;  %s275_s30 = int_to_ptr.hbm [resolvable:$true] %s274_s30 }
   0x9   :  { %84 = vmatpush.msra.mxu1 %v70_v3  ;;  %57 = vmatpush.msra.mxu0 %v35_v1  ;;  %v68_v5 = vld [vmem:[#allocation2 + $0x80] sm:$0xff]  ;;  %v65_v8 = vld [vmem:[#allocation2 + $0x50] sm:$0xff]  ;;  %v124_v17 = vld [vmem:[#allocation2 + $0x198] sm:$0xff] }
   0xa   :  { %288 = vmatmul.msk.f32.vlgmr.msra.gmra.mxu0 %vm38_vm0, %v33_v2  ;;  %v66_v7 = vld [vmem:[#allocation2 + $0x60] sm:$0xff]  ;;  %v63_v10 = vld [vmem:[#allocation2 + $0x30] sm:$0xff]  ;;  %162 = vmatpush.msra.mxu3 %v126_v15  ;;  %v122_v19 = vld [vmem:[#allocation2 + $0x188] sm:$0xff] }
   0xb   :  { %85 = vmatpush.msra.mxu1 %v69_v4  ;;  %v64_v9 = vld [vmem:[#allocation2 + $0x40] sm:$0xff]  ;;  %v127_v12 = vld [vmem:[#allocation2 + $0x1b0] sm:$0xff]  ;;  %v120_v21 = vld [vmem:[#allocation2 + $0x178] sm:$0xff] }
   0xc   :  { %v405_v11 = vld [vmem:[%s423_s1] sm:$0x3]  ;;  %141 = vmatpush.msra.mxu2 %v127_v12  ;;  %v123_v16 = vld [vmem:[#allocation2 + $0x190] sm:$0xff]  ;;  %163 = vmatpush.msra.mxu3 %v124_v17  ;;  %v118_v23 = vld [vmem:[#allocation2 + $0x168] sm:$0xff] }
   0xd   :  { %86 = vmatpush.msra.mxu1 %v68_v5  ;;  %132 = vrot.lane.b32.xlu0 %v405_v11, %s369_s24  ;;  %v125_v14 = vld [vmem:[#allocation2 + $0x1a0] sm:$0xff]  ;;  %v119_v20 = vld [vmem:[#allocation2 + $0x170] sm:$0xff]  ;;  %v116_v25 = vld [vmem:[#allocation2 + $0x158] sm:$0xff] }
   0xe   :  { %142 = vmatpush.msra.mxu2 %v125_v14  ;;  %v121_v18 = vld [vmem:[#allocation2 + $0x180] sm:$0xff]  ;;  %164 = vmatpush.msra.mxu3 %v122_v19  ;;  %v115_v24 = vld [vmem:[#allocation2 + $0x150] sm:$0xff]  ;;  %v114_v27 = vld [vmem:[#allocation2 + $0x148] sm:$0xff] }
   0xf   :  { %87 = vmatpush.msra.mxu1 %v67_v6  ;;  %v117_v22 = vld [vmem:[#allocation2 + $0x160] sm:$0xff]  ;;  %v111_v28 = vld [vmem:[#allocation2 + $0x130] sm:$0xff]  ;;  %v112_v29 = vld [vmem:[#allocation2 + $0x138] sm:$0xff] }
  0x10   :  { %143 = vmatpush.msra.mxu2 %v123_v16  ;;  %165 = vmatpush.msra.mxu3 %v120_v21  ;;  %v113_v26 = vld [vmem:[#allocation2 + $0x140] sm:$0xff]  ;;  %v110_v31 = vld [vmem:[#allocation2 + $0x128] sm:$0xff]  ;;  %v107_v36 = vld [vmem:[#allocation2 + $0x110] sm:$0xff] }
  0x11   :  { %88 = vmatpush.msra.mxu1 %v66_v7  ;;  %v109_v30 = vld [vmem:[#allocation2 + $0x120] sm:$0xff]  ;;  %v108_v37 = vld [vmem:[#allocation2 + $0x118] sm:$0xff]  ;;  %v106_v39 = vld [vmem:[#allocation2 + $0x108] sm:$0xff] }
  0x12   :  { %144 = vmatpush.msra.mxu2 %v121_v18  ;;  %166 = vmatpush.msra.mxu3 %v118_v23  ;;  %v37_v32 = vld [vmem:[#allocation2 + $0x20] ss:$0 sm:$0xff]  ;;  %v103_v40 = vld [vmem:[#allocation2 + $0xf0] sm:$0xff]  ;;  %v104_v41 = vld [vmem:[#allocation2 + $0xf8] sm:$0xff] }
  0x13   :  { %89 = vmatpush.msra.mxu1 %v65_v8  ;;  %v105_v38 = vld [vmem:[#allocation2 + $0x100] sm:$0xff]  ;;  %v102_v43 = vld [vmem:[#allocation2 + $0xe8] sm:$0xff]  ;;  %v99_v44 = vld [vmem:[#allocation2 + $0xd0] sm:$0xff] }
  0x14   :  { %145 = vmatpush.msra.mxu2 %v119_v20  ;;  %167 = vmatpush.msra.mxu3 %v116_v25  ;;  %v101_v42 = vld [vmem:[#allocation2 + $0xe0] sm:$0xff]  ;;  %v100_v45 = vld [vmem:[#allocation2 + $0xd8] sm:$0xff]  ;;  %v98_v47 = vld [vmem:[#allocation2 + $0xc8] sm:$0xff] }
  0x15   :  { %90 = vmatpush.msra.mxu1 %v64_v9  ;;  %v97_v46 = vld [vmem:[#allocation2 + $0xc0] sm:$0xff]  ;;  %v71_v48 = vld [vmem:[#allocation2 + $0xb0] ss:$0 sm:$0xff] }
  0x16   :  { %146 = vmatpush.msra.mxu2 %v117_v22  ;;  %168 = vmatpush.msra.mxu3 %v114_v27  ;;  %v130_v54 = vld [vmem:[#allocation2 + $0x1c0] ss:$8 sm:$0x3]  ;;  %v235_v17 = vld [vmem:[#allocation2 + $0x230] sm:$0xff] }
  0x17   :  { %91 = vmatpush.msra.mxu1 %v63_v10  ;;  %v137_v55 = vperm.slane %v130_v54, 0  ;;  %v138_v61 = vperm.slane %v130_v54, 1  ;;  %v236_v16 = vld [vmem:[#allocation2 + $0x240] sm:$0xff]  ;;  %v233_v19 = vld [vmem:[#allocation2 + $0x210] sm:$0xff] }
  0x18   :  { %147 = vmatpush.msra.mxu2 %v115_v24  ;;  %169 = vmatpush.msra.mxu3 %v112_v29  ;;  %v234_v18 = vld [vmem:[#allocation2 + $0x220] sm:$0xff]  ;;  %v231_v22 = vld [vmem:[#allocation2 + $0x1f0] sm:$0xff] }
  0x19   :  { %251 = vmatpush.msrb.mxu0 %v236_v16  ;;  %v232_v20 = vld [vmem:[#allocation2 + $0x200] sm:$0xff]  ;;  %v229_v25 = vld [vmem:[#allocation2 + $0x1d0] sm:$0xff] }
  0x1a   :  { %148 = vmatpush.msra.mxu2 %v113_v26  ;;  %170 = vmatpush.msra.mxu3 %v110_v31  ;;  %v230_v24 = vld [vmem:[#allocation2 + $0x1e0] sm:$0xff] }
  0x1b   :  { %252 = vmatpush.msrb.mxu0 %v235_v17 }
  0x1c   :  { %149 = vmatpush.msra.mxu2 %v111_v28  ;;  %171 = vmatpush.msra.mxu3 %v108_v37 }
  0x1d   :  { %253 = vmatpush.msrb.mxu0 %v234_v18 }
  0x1e   :  { %150 = vmatpush.msra.mxu2 %v109_v30  ;;  %172 = vmatpush.msra.mxu3 %v106_v39 }
  0x1f   :  { %254 = vmatpush.msrb.mxu0 %v233_v19 }
  0x20   :  { %151 = vmatpush.msra.mxu2 %v107_v36  ;;  %173 = vmatpush.msra.mxu3 %v104_v41 }
  0x21   :  { %255 = vmatpush.msrb.mxu0 %v232_v20 }
  0x22   :  { %152 = vmatpush.msra.mxu2 %v105_v38  ;;  %174 = vmatpush.msra.mxu3 %v102_v43 }
  0x23   :  { %256 = vmatpush.msrb.mxu0 %v231_v22 }
  0x24   :  { %153 = vmatpush.msra.mxu2 %v103_v40  ;;  %175 = vmatpush.msra.mxu3 %v100_v45  ;;  %v237_v40 = vld [vmem:[#allocation2 + $0x250] ss:$0 sm:$0xff] }
  0x25   :  { %257 = vmatpush.msrb.mxu0 %v230_v24 }
  0x26   :  { %154 = vmatpush.msra.mxu2 %v101_v42  ;;  %176 = vmatpush.msra.mxu3 %v98_v47 }
  0x27   :  { %258 = vmatpush.msrb.mxu0 %v229_v25 }
  0x28   :  { %155 = vmatpush.msra.mxu2 %v99_v44 }
  0x2a   :  { %156 = vmatpush.msra.mxu2 %v97_v46 }
  0x7f   :  { %v133_v51 = vpop.permute.xlu0 %132 }
  0x87   :  { %v59_v33 = vpop.f32.mrf.mxu0 }
  0x88   :  { %v60_v34 = vadd.f32 %v59_v33, %v37_v32 }
  0x8a   :  { %298 = vtanh.f32 %v60_v34 }
  0x90   :  { %v299_v35 = vpop.eup %298 }
  0x91   :  { %289 = vmatmul.msk.f32.vlgmr.msra.gmra.mxu1 %vm72_vm1, %v299_v35 }
 0x10e   :  { %v93_v49 = vpop.f32.mrf.mxu1 }
 0x10f   :  { %v94_v50 = vadd.f32 %v93_v49, %v71_v48 }
 0x111   :  { %300 = vtanh.f32 %v94_v50 }
 0x117   :  { %v301_v52 = vpop.eup %300 }
 0x118   :  { %v135_v53 = vsel %vm72_vm1, %v301_v52, %v133_v51 }
 0x119   :  { %157 = vmatmul.f32.vlgmr.msra.gmra.mxu2 %v135_v53  ;;  %177 = vmatmul.f32.vlgmr.msra.gmra.mxu3 %v135_v53 }
 0x19c   :  { %v158_v56 = vpop.f32.mrf.mxu2  ;;  %v178_v62 = vpop.f32.mrf.mxu3 }
 0x19d   :  { %v159_v57 = vadd.f32 %v158_v56, %v137_v55  ;;  %v179_v0 = vadd.f32 %v178_v62, %v138_v61 }
 0x19f   :  { %v290_v58 = vmul.f32 -1.442695, %v159_v57  ;;  %v291_v13 = vmul.f32 -1.442695, %v179_v0 }
 0x1a1   :  { %302 = vpow2.f32 %v290_v58 }
 0x1a7   :  { %v303_v59 = vpop.eup %302 }
 0x1a8   :  { %v184_v60 = vadd.f32 1.0, %v303_v59 }
 0x1aa   :  { %304 = vrcp.f32 %v184_v60  ;;  %v196_v3 = vand.u32 2147483648, %v184_v60  ;;  %v194_v5 = vand.u32 2147483647, %v184_v60  ;;  %vm190_vm3 = vweird.f32 %v184_v60 }
 0x1ab   :  { %306 = vtanh.f32 %v179_v0 }
 0x1ac   :  { %v197_v7 = vor.u32 1.1754944e-38, %v196_v3  ;;  %vm195_vm5 = vcmp.eq.f32.partialorder %v194_v5, 8.507059e+37  ;;  %308 = vpow2.f32 %v291_v13 }
 0x1b0   :  { %v305_v63 = vpop.eup %304 }
 0x1b1   :  { %v186_v1 = vmul.f32 %v305_v63, %v184_v60  ;;  %vm191_vm2 = vweird.f32 %v305_v63  ;;  %v307_v9 = vpop.eup %306 }
 0x1b2   :  { %vm192_vm4 = vmor %vm190_vm3, %vm191_vm2  ;;  %v309_v14 = vpop.eup %308 }
 0x1b3   :  { %v187_v2 = vsub.f32 1.0, %v186_v1  ;;  %v204_v15 = vadd.f32 1.0, %v309_v14 }
 0x1b5   :  { %v188_v4 = vmul.f32 %v305_v63, %v187_v2  ;;  %310 = vrcp.f32 %v204_v15  ;;  %v216_v32 = vand.u32 2147483648, %v204_v15  ;;  %vm210_vm7 = vweird.f32 %v204_v15 }
 0x1b6   :  { %v214_v33 = vand.u32 2147483647, %v204_v15 }
 0x1b7   :  { %v189_v6 = vadd.f32 %v305_v63, %v188_v4  ;;  %v217_v35 = vor.u32 1.1754944e-38, %v216_v32 }
 0x1b8   :  { %vm215_vm9 = vcmp.eq.f32.partialorder %v214_v33, 8.507059e+37 }
 0x1b9   :  { %v193_v8 = vsel %vm192_vm4, %v305_v63, %v189_v6 }
 0x1ba   :  { %v198_v10 = vsel %vm195_vm5, %v197_v7, %v193_v8 }
 0x1bb   :  { %v221_v12 = vmul.f32 %v307_v9, %v198_v10  ;;  %v311_v21 = vpop.eup %310  ;;  %v220_v28 = vmul.f32 %v198_v10, %v405_v11 }
 0x1bc   :  { %v206_v23 = vmul.f32 %v311_v21, %v204_v15  ;;  %vm211_vm6 = vweird.f32 %v311_v21 }
 0x1bd   :  { %223 = vrot.lane.b32.xlu0 %v221_v12, %s369_s24  ;;  %vm212_vm8 = vmor %vm210_vm7, %vm211_vm6 }
 0x1be   :  { %v207_v26 = vsub.f32 1.0, %v206_v23 }
 0x1c0   :  { %v208_v27 = vmul.f32 %v311_v21, %v207_v26 }
 0x1c2   :  { %v209_v31 = vadd.f32 %v311_v21, %v208_v27 }
 0x1c4   :  { %v213_v34 = vsel %vm212_vm8, %v311_v21, %v209_v31 }
 0x1c5   :  { %v218_v37 = vsel %vm215_vm9, %v217_v35, %v213_v34 }
 0x22f   :  { %v224_v29 = vpop.permute.xlu0 %223 }
 0x230   :  { %v226_v30 = vadd.f32 %v224_v29, %v220_v28 }
 0x232   :  { %312 = vtanh.f32 %v226_v30 }
 0x238   :  { %v313_v36 = vpop.eup %312 }
 0x239   :  { %v228_v38 = vmul.f32 %v313_v36, %v218_v37 }
 0x23b   :  { %239 = vrot.lane.b32.xlu1 %v228_v38, %s369_s24 }
 0x2ad   :  { %v240_v39 = vpop.permute.xlu1 %239 }
 0x2ae   :  { %v265_v11 = vsel %vm72_vm1, %v240_v39, %v226_v30  ;;  %292 = vmatmul.msk.f32.vlgmr.msrb.gmra.mxu0 %vm72_vm1, %v240_v39 }
 0x2af   :  { %266 = vst [vmem:[%s426_s4] sm:$0x3] %v265_v11 }
 0x32b   :  { %v260_v41 = vpop.f32.mrf.mxu0 }
 0x32c   :  { %v261_v42 = vadd.f32 %v260_v41, %v237_v40 }
 0x32e   :  { %263 = vst [vmem:[#allocation5] sm:$0x3] %v261_v42 }
 0x32f   :  { %277 = dma.vmem_to_hbm [thread:$0]  %s273_s27, 32, %s275_s30, [#allocation4]  }
 0x330   :  { %364 = dma.done.wait [#allocation4], 32  }
 0x331   :  { %365 = vsyncadd [#allocation4], 4294967264 }
 0x332   :  { %286 = vsyncpa [#allocation3], 1 }
 0x333   :  { %287 = vsyncpa [#allocation4], 1 }

</bundles_post_ra>
